<compile_context>
chip_gen: v5e
topology: v5e:2x2
jax: 0.10.0
libtpu: 0.0.40
codegen_flags: <defaults>
</compile_context>

<pallas_src>
import functools

import jax
import jax.numpy as jnp
from jax.experimental import pallas as pl
from jax.experimental.pallas import tpu as pltpu

LANES = 128
SUBLANES = 8


def _round_up(x, m):
    return -(-x // m) * m


def _tpu_topology():
    """Best-effort (num TensorCores per chip, default tile_rows)."""
    kind = ""
    try:
        kind = (getattr(jax.devices()[0], "device_kind", "") or "").lower()
    except Exception:
        pass
    if "v7" in kind:
        # v7x: 2 TCs/chip, ~3.2 TB/s HBM -> larger tiles amortize per-step overhead.
        return 2, 4096
    # v5e/v6e (single TC): 2048 rows ~= 1 MiB/stream per step, ~86% of HBM roofline.
    return 1, 2048


def _contrastive_kernel(yt_ref, yp_ref, out_ref, *, margin):
    """Accumulates per-lane partial sums of the contrastive-loss terms."""
    step = pl.program_id(1)

    @pl.when(step == 0)
    def _init():
        out_ref[...] = jnp.zeros_like(out_ref)

    yt = yt_ref[...].astype(jnp.float32)
    yp = yp_ref[...].astype(jnp.float32)

    square_pred = yp * yp
    clamped = jnp.maximum(jnp.float32(margin) - yp, 0.0)
    margin_square = clamped * clamped
    # (1 - yt)*sq + yt*msq  ==  sq + yt*(msq - sq): one fewer VALU op per
    # element; exact for 0/1 labels (FP reassociation otherwise).
    term = square_pred + yt * (margin_square - square_pred)

    groups = term.shape[0] // SUBLANES
    # Fold the (tile_rows, 128) tile to a single (8, 128) slab (pure vreg adds)
    # and accumulate into the resident output block -- no big scratch.
    out_ref[...] += term.reshape(groups, SUBLANES, LANES).sum(axis=0)


def _partial_sums(yt, yp, *, parts, steps, tile_rows, margin, core_parallel=False):
    """Runs the kernel over the first parts*steps*tile_rows rows of (rows,128) inputs.

    Returns (parts*8, 128) float32 per-lane partial sums.
    """
    assert yt.shape == yp.shape and yt.shape[1] == LANES
    assert yt.shape[0] >= parts * steps * tile_rows

    in_blk = pl.BlockSpec((tile_rows, LANES), lambda c, i: (c * steps + i, 0))
    out_blk = pl.BlockSpec((SUBLANES, LANES), lambda c, i: (c, 0))

    part_sem = pltpu.CORE_PARALLEL if (core_parallel and parts > 1) else pltpu.ARBITRARY
    kernel = functools.partial(_contrastive_kernel, margin=margin)

    return pl.pallas_call(
        kernel,
        out_shape=jax.ShapeDtypeStruct((parts * SUBLANES, LANES), jnp.float32),
        grid_spec=pltpu.PrefetchScalarGridSpec(
            num_scalar_prefetch=0,
            grid=(parts, steps),
            in_specs=[in_blk, in_blk],
            out_specs=out_blk,
        ),
        compiler_params=pltpu.CompilerParams(
            dimension_semantics=(part_sem, pltpu.ARBITRARY),
        ),
    )(yt, yp)


def contrastive_loss(y_true, y_pred, margin=1.0, tile_rows=None):
    """Pallas TPU implementation of ContrastiveLoss.forward (returns scalar mean)."""
    assert y_true.shape == y_pred.shape, "y_true and y_pred must have the same shape"
    n = int(y_pred.size)
    assert n > 0

    yt = jnp.ravel(y_true)
    yp = jnp.ravel(y_pred)

    # Dtype policy: keep native 16/32-bit floats (less HBM traffic); promote
    # bool/int labels to bf16 (exact for 0/1 labels -> half the label bytes of
    # f32); promote anything wider than 32 bits to f32.
    if not jnp.issubdtype(yt.dtype, jnp.floating):
        yt = yt.astype(jnp.bfloat16)
    elif yt.dtype.itemsize > 4:
        yt = yt.astype(jnp.float32)
    if (not jnp.issubdtype(yp.dtype, jnp.floating)) or yp.dtype.itemsize > 4:
        yp = yp.astype(jnp.float32)

    # Sublane granularity: 8 rows for f32, 16 for bf16/f16 (packed dtypes).
    row_align = SUBLANES * max(4 // yt.dtype.itemsize, 4 // yp.dtype.itemsize)

    cores, default_tile = _tpu_topology()
    tile_target = default_tile if tile_rows is None else int(tile_rows)
    tile_target = max(row_align, (tile_target // row_align) * row_align)

    # Minimal zero padding: only to the sublane quantum (row_align*128 elems),
    # and none at all when n is already aligned.  (When n is not a multiple of
    # 128 the pad is still a whole-array copy in XLA -- unavoidable to get a
    # lane-dense 2-D view -- but the pad granularity no longer scales with the
    # tile size / part count.)
    quantum = row_align * LANES
    padded = _round_up(n, quantum)
    if padded != n:
        yt = jnp.pad(yt, (0, padded - n))
        yp = jnp.pad(yp, (0, padded - n))

    rows = padded // LANES
    yt = yt.reshape(rows, LANES)
    yp = yp.reshape(rows, LANES)

    # Grid layout: `parts` (2 only on multi-TC v7x, when there is enough work)
    # x `steps` big tiles, exactly tiling a prefix of the rows.  Zero-padded
    # rows contribute exactly 0 (yp=0 kills the square term, yt=0 kills the
    # margin term), so no mask stream is ever needed.
    if cores > 1 and rows >= cores * tile_target:
        parts, tile = cores, tile_target
    else:
        parts, tile = 1, min(tile_target, rows)

    steps = rows // (parts * tile)
    main_rows = parts * steps * tile
    tail_rows = rows - main_rows

    total = jnp.sum(
        _partial_sums(yt, yp, parts=parts, steps=steps, tile_rows=tile,
                      margin=float(margin), core_parallel=(cores > 1)))

    if tail_rows > 0:
        # Remaining (< parts*tile, sublane-aligned) rows: tiny second
        # pallas_call on a small tail slice (single in-bounds block).
        total = total + jnp.sum(
            _partial_sums(yt[main_rows:], yp[main_rows:], parts=1, steps=1,
                          tile_rows=tail_rows, margin=float(margin)))

    return total / jnp.float32(n)


def contrastive_loss_ref(y_true, y_pred, margin=1.0):
    y_true = y_true.astype(jnp.float32)
    y_pred = y_pred.astype(jnp.float32)
    square_pred = jnp.square(y_pred)
    margin_square = jnp.square(jnp.maximum(margin - y_pred, 0.0))
    return jnp.mean((1.0 - y_true) * square_pred + y_true * margin_square)


if __name__ == "__main__":
    key = jax.random.PRNGKey(0)
    k1, k2, k3, k4, k5, k6, k7, k8 = jax.random.split(key, 8)

    # Case 1: batch of 8 pairwise distances (f32).
    y_true = (jax.random.uniform(k1, (8,)) > 0.5).astype(jnp.float32)
    y_pred = jax.random.uniform(k2, (8,), minval=0.0, maxval=2.0)
    loss = jax.block_until_ready(contrastive_loss(y_true, y_pred, margin=1.0))
    ref = contrastive_loss_ref(y_true, y_pred, margin=1.0)
    assert jnp.allclose(loss, ref, rtol=1e-5, atol=1e-6), (loss, ref)

    # Case 2: (2, 4, 16) labels/predictions to exercise the flatten path.
    y_true2 = (jax.random.uniform(k3, (2, 4, 16)) > 0.5).astype(jnp.float32)
    y_pred2 = jax.random.normal(k4, (2, 4, 16)) * 0.7 + 0.5
    loss2 = jax.block_until_ready(contrastive_loss(y_true2, y_pred2, margin=1.0))
    ref2 = contrastive_loss_ref(y_true2, y_pred2, margin=1.0)
    assert jnp.allclose(loss2, ref2, rtol=1e-5, atol=1e-6), (loss2, ref2)

    # Case 3: bf16 inputs stream through in their native dtype.
    y_true3 = (jax.random.uniform(k5, (4, 8)) > 0.5).astype(jnp.bfloat16)
    y_pred3 = jax.random.uniform(k6, (4, 8), minval=0.0, maxval=2.0).astype(jnp.bfloat16)
    loss3 = jax.block_until_ready(contrastive_loss(y_true3, y_pred3, margin=1.0))
    ref3 = contrastive_loss_ref(y_true3, y_pred3, margin=1.0)
    assert jnp.allclose(loss3, ref3, rtol=1e-3, atol=1e-3), (loss3, ref3)

    # Case 4: boolean labels (wrapper promotes to bf16), f32 predictions.
    y_true4 = jax.random.uniform(k7, (16, 8)) > 0.5
    y_pred4 = jax.random.uniform(k8, (16, 8), minval=0.0, maxval=2.0)
    loss4 = jax.block_until_ready(contrastive_loss(y_true4, y_pred4, margin=1.0))
    ref4 = contrastive_loss_ref(y_true4, y_pred4, margin=1.0)
    assert jnp.allclose(loss4, ref4, rtol=1e-5, atol=1e-6), (loss4, ref4)

    # Case 5: misaligned size + small tile override -> exercises the minimal
    # sublane-quantum pad and the main + tail two-call path.
    y_true5 = (jax.random.uniform(k1, (3000,)) > 0.5).astype(jnp.float32)
    y_pred5 = jax.random.normal(k2, (3000,)) * 0.8 + 0.4
    loss5 = jax.block_until_ready(contrastive_loss(y_true5, y_pred5, margin=1.0, tile_rows=16))
    ref5 = contrastive_loss_ref(y_true5, y_pred5, margin=1.0)
    assert jnp.allclose(loss5, ref5, rtol=1e-5, atol=1e-6), (loss5, ref5)

    print("KERNEL_OK")
</pallas_src>

<mosaic_0001>
module attributes {stable_mosaic.version = 11 : i64} {
  func.func @_contrastive_kernel(%arg0: i32, %arg1: i32, %arg2: memref<8x128xf32, #tpu.memory_space<vmem>>, %arg3: memref<8x128xf32, #tpu.memory_space<vmem>>, %arg4: memref<8x128xf32, #tpu.memory_space<vmem>>) attributes {dimension_semantics = [#tpu.dimension_semantics<arbitrary>, #tpu.dimension_semantics<arbitrary>], iteration_bounds = array<i64: 1, 1>, scalar_prefetch = 0 : i64, scratch_operands = 0 : i64, tpu.core_type = #tpu.core_type<tc>, window_params = [{transform_indices = @transform_0, window_bounds = array<i64: 8, 128>}, {transform_indices = @transform_1, window_bounds = array<i64: 8, 128>}, {transform_indices = @transform_2, window_bounds = array<i64: 8, 128>}]} {
    %c0_i32 = arith.constant 0 : i32
    %0 = arith.cmpi eq, %arg1, %c0_i32 : i32
    %1 = arith.extui %0 : i1 to i32
    %c0_i32_0 = arith.constant 0 : i32
    %2 = arith.cmpi ne, %1, %c0_i32_0 : i32
    scf.if %2 {
      %cst_10 = arith.constant 0.000000e+00 : f32
      %19 = vector.broadcast %cst_10 : f32 to vector<8x128xf32>
      %c0_11 = arith.constant 0 : index
      %c0_12 = arith.constant 0 : index
      %20 = vector.load %arg4[%c0_11, %c0_12] : memref<8x128xf32, #tpu.memory_space<vmem>>, vector<8x128xf32>
      tpu.vector_store %arg4[%c0_11, %c0_12], %19 {strides = array<i32>} : memref<8x128xf32, #tpu.memory_space<vmem>>, vector<8x128xf32>,
    } else {
    }
    %c0 = arith.constant 0 : index
    %c0_1 = arith.constant 0 : index
    %3 = vector.load %arg2[%c0, %c0_1] : memref<8x128xf32, #tpu.memory_space<vmem>>, vector<8x128xf32>
    %c0_2 = arith.constant 0 : index
    %c0_3 = arith.constant 0 : index
    %4 = vector.load %arg3[%c0_2, %c0_3] : memref<8x128xf32, #tpu.memory_space<vmem>>, vector<8x128xf32>
    %5 = arith.mulf %4, %4 : vector<8x128xf32>
    %cst = arith.constant 1.000000e+00 : f32
    %6 = vector.broadcast %cst : f32 to vector<8x128xf32>
    %7 = arith.subf %6, %4 : vector<8x128xf32>
    %cst_4 = arith.constant 0.000000e+00 : f32
    %8 = vector.broadcast %cst_4 : f32 to vector<8x128xf32>
    %9 = arith.maximumf %7, %8 : vector<8x128xf32>
    %10 = arith.mulf %9, %9 : vector<8x128xf32>
    %11 = arith.subf %10, %5 : vector<8x128xf32>
    %12 = arith.mulf %3, %11 : vector<8x128xf32>
    %13 = arith.addf %5, %12 : vector<8x128xf32>
    %c0_5 = arith.constant 0 : index
    %c0_6 = arith.constant 0 : index
    %14 = vector.load %arg4[%c0_5, %c0_6] : memref<8x128xf32, #tpu.memory_space<vmem>>, vector<8x128xf32>
    %15 = vector.shape_cast %13 : vector<8x128xf32> to vector<1x8x128xf32>
    %cst_7 = arith.constant dense<0.000000e+00> : vector<8x128xf32>
    %16 = vector.multi_reduction <add>, %15, %cst_7 [0] : vector<1x8x128xf32> to vector<8x128xf32>
    %17 = arith.addf %14, %16 : vector<8x128xf32>
    %c0_8 = arith.constant 0 : index
    %c0_9 = arith.constant 0 : index
    %18 = vector.load %arg4[%c0_8, %c0_9] : memref<8x128xf32, #tpu.memory_space<vmem>>, vector<8x128xf32>
    tpu.vector_store %arg4[%c0_8, %c0_9], %17 {strides = array<i32>} : memref<8x128xf32, #tpu.memory_space<vmem>>, vector<8x128xf32>,
    return
  }
  func.func @transform_0(%arg0: i32, %arg1: i32) -> (i32, i32) {
    %c1_i32 = arith.constant 1 : i32
    %0 = arith.muli %arg0, %c1_i32 : i32
    %1 = arith.addi %0, %arg1 : i32
    %c0_i32 = arith.constant 0 : i32
    %c0_i32_0 = arith.constant 0 : i32
    return %1, %c0_i32 : i32, i32
  }
  func.func @transform_1(%arg0: i32, %arg1: i32) -> (i32, i32) {
    %c1_i32 = arith.constant 1 : i32
    %0 = arith.muli %arg0, %c1_i32 : i32
    %1 = arith.addi %0, %arg1 : i32
    %c0_i32 = arith.constant 0 : i32
    %c0_i32_0 = arith.constant 0 : i32
    return %1, %c0_i32 : i32, i32
  }
  func.func @transform_2(%arg0: i32, %arg1: i32) -> (i32, i32) {
    %c0_i32 = arith.constant 0 : i32
    %c0_i32_0 = arith.constant 0 : i32
    return %arg0, %c0_i32 : i32, i32
  }
}

</mosaic_0001>

<bundles_post_ra>
// kernel: tpu_custom_call.1
= control target key start
LH: loop header
LB: loop body
LE: loop exit
PB: predicated region body
PF: predicated region fallthrough
CT: control target
= control target key end

     0   :  { %7 = vsyncpa [#allocation3], 0  ;;  %s193_s0 = inlined_call_operand.hbm [shape: f32[8,128], index: 0, kind: input, shape index: {}]   ;;  %s194_s1 = inlined_call_operand.hbm [shape: f32[8,128], index: 1, kind: input, shape index: {}]   ;;  %s195_s2 = inlined_call_operand.hbm [shape: f32[8,128], index: 2, kind: output, shape index: {}]  }
   0x1   :  { %8 = vsyncpa [#allocation6], 0 }
   0x2   :  { %9 = vsyncpa [#allocation4], 0  ;;  %s18_s11 = sshll.u32 %s193_s0, 4  ;;  %s166_s12 = smov [#allocation2]   ;;  %s19_s11 = int_to_ptr.hbm [resolvable:$true] %s18_s11 }
   0x3   :  { %s20_s13 = sshll.u32 %s166_s12, 4  ;;  %s32_s16 = sshll.u32 %s194_s1, 4  ;;  %s21_s13 = int_to_ptr.vmem [resolvable:$true] %s20_s13  ;;  %s33_s16 = int_to_ptr.hbm [resolvable:$true] %s32_s16 }
   0x4   :  { %23 = dma.hbm_to_vmem [thread:$0]  %s19_s11, 128, %s21_s13, [#allocation3]  }
   0x5   :  { %s167_s17 = smov [#allocation5]  }
   0x6   :  { %s34_s18 = sshll.u32 %s167_s17, 4  ;;  %s35_s18 = int_to_ptr.vmem [resolvable:$true] %s34_s18 }
   0x7   :  { %37 = dma.hbm_to_vmem [thread:$0]  %s33_s16, 128, %s35_s18, [#allocation6]  }
   0x8   :  { %160 = dma.done.wait [#allocation3], 128  }
   0x9   :  { %161 = vsyncadd [#allocation3], 4294967168 }
   0xa   :  { %162 = dma.done.wait [#allocation6], 128  }
   0xb   :  { %163 = vsyncadd [#allocation6], 4294967168  ;;  %v54_v0 = vld [vmem:[#allocation5] sm:$0xff]  ;;  %v53_v5 = vld [vmem:[#allocation2] sm:$0xff]  ;;  %s168_s0 = smov [#allocation7]   ;;  %s73_s21 = sshll.u32 %s195_s2, 4  ;;  %s74_s21 = int_to_ptr.hbm [resolvable:$true] %s73_s21 }
   0xc   :  { %v56_v1 = vsub.f32 1.0, %v54_v0  ;;  %v55_v2 = vmul.f32 %v54_v0, %v54_v0  ;;  %s71_s1 = sshll.u32 %s168_s0, 4  ;;  %s72_s1 = int_to_ptr.vmem [resolvable:$true] %s71_s1 }
   0xe   :  { %v57_v3 = vmax.f32 %v56_v1, 0.0 }
  0x10   :  { %v58_v4 = vmul.f32 %v57_v3, %v57_v3 }
  0x12   :  { %v59_v6 = vsub.f32 %v58_v4, %v55_v2 }
  0x14   :  { %v60_v7 = vmul.f32 %v59_v6, %v53_v5 }
  0x16   :  { %v61_v8 = vadd.f32 %v60_v7, %v55_v2 }
  0x18   :  { %65 = vst [vmem:[#allocation7] sm:$0xff] %v61_v8 }
  0x19   :  { %76 = dma.vmem_to_hbm [thread:$0]  %s72_s1, 128, %s74_s21, [#allocation4]  }
  0x1a   :  { %164 = dma.done.wait [#allocation4], 128  }
  0x1b   :  { %165 = vsyncadd [#allocation4], 4294967168 }
  0x1c   :  { %81 = vsyncpa [#allocation3], 1 }
  0x1d   :  { %82 = vsyncpa [#allocation6], 1 }
  0x1e   :  { %83 = vsyncpa [#allocation4], 1 }

</bundles_post_ra>
